<compile_context>
chip_gen: v6e
topology: v6e:2x2x1
jax: 0.10.0
libtpu: 0.0.40
codegen_flags: <defaults>
</compile_context>

<pallas_src>
import functools
import math

import jax
import jax.numpy as jnp
from jax.experimental import pallas as pl
from jax.experimental.pallas import tpu as pltpu


# ----------------------------------------------------------------------------
# Kernel: LayerNorm + multi-head self-attention for the full batch.
# ----------------------------------------------------------------------------
def mhsa_kernel(x_ref, wqkv_ref, wo_ref, vec_ref, o_ref, *,
                num_heads, batch, compute_dtype):
    """
    x_ref:    (B*S, D)  activations (batch folded into rows)
    wqkv_ref: (D, 3D)   packed q/k/v projection (x @ W layout)
    wo_ref:   (D, D)    output projection
    vec_ref:  (6, D)    rows: [ln_gamma, ln_beta, b_q, b_k, b_v, b_o]
    o_ref:    (B*S, D)  attention output
    """
    x = x_ref[...].astype(jnp.float32)                  # (BS, D)
    BS, D = x.shape
    S = BS // batch
    H = num_heads
    Hd = D // H

    vec = vec_ref[...].astype(jnp.float32)              # (6, D)
    ln_g, ln_b = vec[0:1], vec[1:2]
    b_q, b_k, b_v, b_o = vec[2:3], vec[3:4], vec[4:5], vec[5:6]

    # ----- LayerNorm (fp32 elementwise on the VPU) -----
    mu = jnp.mean(x, axis=-1, keepdims=True)
    var = jnp.mean((x - mu) ** 2, axis=-1, keepdims=True)
    xn = (x - mu) * jax.lax.rsqrt(var + 1e-5) * ln_g + ln_b

    # ----- QKV projection: one matmul for the whole batch -----
    qkv = jnp.dot(xn.astype(compute_dtype),
                  wqkv_ref[...].astype(compute_dtype),
                  preferred_element_type=jnp.float32)   # (BS, 3D) fp32
    q = qkv[:, 0 * D:1 * D] + b_q
    k = qkv[:, 1 * D:2 * D] + b_k
    v = qkv[:, 2 * D:3 * D] + b_v

    scale = 1.0 / math.sqrt(Hd)

    def split_heads(t):
        # (S, D) -> (H, S, Hd) via head slices stacked on a leading batch dim.
        return jnp.stack([t[:, h * Hd:(h + 1) * Hd] for h in range(H)], axis=0)

    def attend_one_batch(qb, kb, vb):
        qh = split_heads(qb).astype(compute_dtype)       # (H, S, Hd)
        kh = split_heads(kb).astype(compute_dtype)
        vh = split_heads(vb).astype(compute_dtype)
        # One batched contraction over all heads (single MXU lowering).
        s = jnp.einsum("hqd,hkd->hqk", qh, kh,
                       preferred_element_type=jnp.float32) * scale
        s = s - jnp.max(s, axis=-1, keepdims=True)       # fp32 softmax
        p = jnp.exp(s)
        inv = pl.reciprocal(jnp.sum(p, axis=-1, keepdims=True), approx=True)
        p = p * inv
        oh = jnp.einsum("hqk,hkd->hqd", p.astype(compute_dtype), vh,
                        preferred_element_type=jnp.float32)   # (H, S, Hd)
        # merge heads back to (S, D)
        return jnp.concatenate([oh[h] for h in range(H)], axis=-1)

    # Attention is per-batch-element; static (tiny) loop over B only.
    rows = [attend_one_batch(q[b * S:(b + 1) * S],
                             k[b * S:(b + 1) * S],
                             v[b * S:(b + 1) * S]) for b in range(batch)]
    attn = rows[0] if batch == 1 else jnp.concatenate(rows, axis=0)  # (BS, D)

    # ----- output projection: one matmul for the whole batch -----
    out = jnp.dot(attn.astype(compute_dtype),
                  wo_ref[...].astype(compute_dtype),
                  preferred_element_type=jnp.float32) + b_o
    o_ref[...] = out.astype(o_ref.dtype)


# ----------------------------------------------------------------------------
# Wrapper: single pallas_call, no grid, everything resident in VMEM.
# ----------------------------------------------------------------------------
def multi_head_self_attention_block(x, params, num_heads, *,
                                    compute_dtype=jnp.float32):
    B, S, D = x.shape
    assert D % num_heads == 0

    # Present activations as one contiguous (B*S, D) slab (free boundary reshape).
    x2d = x.reshape(B * S, D)

    # Consolidate the 6 tiny per-channel parameters into one (6, D) block.
    vec = jnp.stack([params["ln_g"], params["ln_b"],
                     params["bq"], params["bk"], params["bv"], params["bo"]],
                    axis=0)

    vmem = pl.BlockSpec(memory_space=pltpu.MemorySpace.VMEM)
    out2d = pl.pallas_call(
        functools.partial(mhsa_kernel, num_heads=num_heads, batch=B,
                          compute_dtype=compute_dtype),
        out_shape=jax.ShapeDtypeStruct((B * S, D), x.dtype),
        in_specs=[vmem, vmem, vmem, vmem],
        out_specs=vmem,
    )(x2d, params["wqkv"], params["wo"], vec)

    return out2d.reshape(B, S, D)


# ----------------------------------------------------------------------------
# Pure-JAX reference (fp32) mirroring PyTorch LayerNorm + MultiheadAttention.
# ----------------------------------------------------------------------------
def ref_mhsa(x, p, num_heads):
    B, S, D = x.shape
    H = num_heads
    Hd = D // H
    mu = jnp.mean(x, -1, keepdims=True)
    var = jnp.mean((x - mu) ** 2, -1, keepdims=True)
    xn = (x - mu) * jax.lax.rsqrt(var + 1e-5) * p["ln_g"] + p["ln_b"]
    qkv = xn @ p["wqkv"]
    q = qkv[..., 0 * D:1 * D] + p["bq"]
    k = qkv[..., 1 * D:2 * D] + p["bk"]
    v = qkv[..., 2 * D:3 * D] + p["bv"]
    q = q.reshape(B, S, H, Hd).transpose(0, 2, 1, 3)
    k = k.reshape(B, S, H, Hd).transpose(0, 2, 1, 3)
    v = v.reshape(B, S, H, Hd).transpose(0, 2, 1, 3)
    s = jnp.einsum("bhqd,bhkd->bhqk", q, k) / math.sqrt(Hd)
    pr = jax.nn.softmax(s, axis=-1)
    o = jnp.einsum("bhqk,bhkd->bhqd", pr, v).transpose(0, 2, 1, 3).reshape(B, S, D)
    return o @ p["wo"] + p["bo"]


# ----------------------------------------------------------------------------
if __name__ == "__main__":
    # Small shapes consistent with the module: (batch, seq, embedding_dim)
    B, S, D, H = 2, 8, 32, 4

    key = jax.random.PRNGKey(0)
    ks = jax.random.split(key, 8)
    sc = 0.02
    params = {
        "ln_g": 1.0 + sc * jax.random.normal(ks[0], (D,), jnp.float32),
        "ln_b": sc * jax.random.normal(ks[1], (D,), jnp.float32),
        "wqkv": sc * jax.random.normal(ks[2], (D, 3 * D), jnp.float32),
        "bq":   sc * jax.random.normal(ks[3], (D,), jnp.float32),
        "bk":   sc * jax.random.normal(ks[4], (D,), jnp.float32),
        "bv":   sc * jax.random.normal(ks[5], (D,), jnp.float32),
        "wo":   sc * jax.random.normal(ks[6], (D, D), jnp.float32),
        "bo":   sc * jax.random.normal(ks[7], (D,), jnp.float32),
    }
    x = jax.random.normal(jax.random.PRNGKey(1), (B, S, D), jnp.float32)

    ref = ref_mhsa(x, params, H)

    # fp32 MXU operands: bit-faithful to the PyTorch fp32 module.
    out_f32 = jax.block_until_ready(
        multi_head_self_attention_block(x, params, H, compute_dtype=jnp.float32))
    assert jnp.allclose(out_f32, ref, atol=1e-4, rtol=1e-4), "fp32 kernel mismatch"

    # bf16 MXU operands (recommended on v6e/v7x); LN/softmax stay fp32.
    out_bf16 = jax.block_until_ready(
        multi_head_self_attention_block(x, params, H, compute_dtype=jnp.bfloat16))
    assert jnp.allclose(out_bf16, ref, atol=2e-3, rtol=1e-2), "bf16 kernel mismatch"

    print("KERNEL_OK")
</pallas_src>

<mosaic_0001>
module attributes {stable_mosaic.version = 11 : i64} {
  func.func @mhsa_kernel(%arg0: memref<16x32xf32, #tpu.memory_space<vmem>>, %arg1: memref<32x96xf32, #tpu.memory_space<vmem>>, %arg2: memref<32x32xf32, #tpu.memory_space<vmem>>, %arg3: memref<6x32xf32, #tpu.memory_space<vmem>>, %arg4: memref<16x32xf32, #tpu.memory_space<vmem>>) attributes {dimension_semantics = [], scalar_prefetch = 0 : i64, scratch_operands = 0 : i64, tpu.core_type = #tpu.core_type<tc>} {
    %c0 = arith.constant 0 : index
    %c0_0 = arith.constant 0 : index
    %0 = vector.load %arg0[%c0, %c0_0] : memref<16x32xf32, #tpu.memory_space<vmem>>, vector<16x32xf32>
    %c0_1 = arith.constant 0 : index
    %c0_2 = arith.constant 0 : index
    %1 = vector.load %arg3[%c0_1, %c0_2] : memref<6x32xf32, #tpu.memory_space<vmem>>, vector<6x32xf32>
    %2 = vector.extract_strided_slice %1 {offsets = [0, 0], sizes = [1, 32], strides = [1, 1]} : vector<6x32xf32> to vector<1x32xf32>
    %3 = vector.extract_strided_slice %1 {offsets = [1, 0], sizes = [1, 32], strides = [1, 1]} : vector<6x32xf32> to vector<1x32xf32>
    %4 = vector.extract_strided_slice %1 {offsets = [2, 0], sizes = [1, 32], strides = [1, 1]} : vector<6x32xf32> to vector<1x32xf32>
    %5 = vector.extract_strided_slice %1 {offsets = [3, 0], sizes = [1, 32], strides = [1, 1]} : vector<6x32xf32> to vector<1x32xf32>
    %6 = vector.extract_strided_slice %1 {offsets = [4, 0], sizes = [1, 32], strides = [1, 1]} : vector<6x32xf32> to vector<1x32xf32>
    %7 = vector.extract_strided_slice %1 {offsets = [5, 0], sizes = [1, 32], strides = [1, 1]} : vector<6x32xf32> to vector<1x32xf32>
    %cst = arith.constant dense<0.000000e+00> : vector<16xf32>
    %8 = vector.multi_reduction <add>, %0, %cst [1] : vector<16x32xf32> to vector<16xf32>
    %9 = vector.shape_cast %8 : vector<16xf32> to vector<16x1xf32>
    %cst_3 = arith.constant 3.200000e+01 : f32
    %10 = vector.broadcast %cst_3 : f32 to vector<16x1xf32>
    %11 = arith.divf %9, %10 : vector<16x1xf32>
    %12 = vector.broadcast %11 : vector<16x1xf32> to vector<16x32xf32>
    %13 = arith.subf %0, %12 : vector<16x32xf32>
    %14 = arith.mulf %13, %13 : vector<16x32xf32>
    %cst_4 = arith.constant dense<0.000000e+00> : vector<16xf32>
    %15 = vector.multi_reduction <add>, %14, %cst_4 [1] : vector<16x32xf32> to vector<16xf32>
    %16 = vector.shape_cast %15 : vector<16xf32> to vector<16x1xf32>
    %cst_5 = arith.constant 3.200000e+01 : f32
    %17 = vector.broadcast %cst_5 : f32 to vector<16x1xf32>
    %18 = arith.divf %16, %17 : vector<16x1xf32>
    %19 = vector.broadcast %11 : vector<16x1xf32> to vector<16x32xf32>
    %20 = arith.subf %0, %19 : vector<16x32xf32>
    %cst_6 = arith.constant 9.99999974E-6 : f32
    %21 = vector.broadcast %cst_6 : f32 to vector<16x1xf32>
    %22 = arith.addf %18, %21 : vector<16x1xf32>
    %23 = math.rsqrt %22 : vector<16x1xf32>
    %24 = vector.broadcast %23 : vector<16x1xf32> to vector<16x32xf32>
    %25 = arith.mulf %20, %24 : vector<16x32xf32>
    %26 = vector.broadcast %2 : vector<1x32xf32> to vector<16x32xf32>
    %27 = arith.mulf %25, %26 : vector<16x32xf32>
    %28 = vector.broadcast %3 : vector<1x32xf32> to vector<16x32xf32>
    %29 = arith.addf %27, %28 : vector<16x32xf32>
    %c0_7 = arith.constant 0 : index
    %c0_8 = arith.constant 0 : index
    %30 = vector.load %arg1[%c0_7, %c0_8] : memref<32x96xf32, #tpu.memory_space<vmem>>, vector<32x96xf32>
    %cst_9 = arith.constant dense<0.000000e+00> : vector<16x96xf32>
    %31 = tpu.matmul %29, %30, %cst_9 {dimension_numbers = #tpu.dot_dimension_numbers<[1], [0], [0], [1], [0, 0, 1, 1], [], []>} : vector<16x32xf32>, vector<32x96xf32>, vector<16x96xf32> -> vector<16x96xf32>
    %32 = vector.extract_strided_slice %31 {offsets = [0, 0], sizes = [16, 32], strides = [1, 1]} : vector<16x96xf32> to vector<16x32xf32>
    %33 = vector.broadcast %4 : vector<1x32xf32> to vector<16x32xf32>
    %34 = arith.addf %32, %33 : vector<16x32xf32>
    %35 = vector.extract_strided_slice %31 {offsets = [0, 32], sizes = [16, 32], strides = [1, 1]} : vector<16x96xf32> to vector<16x32xf32>
    %36 = vector.broadcast %5 : vector<1x32xf32> to vector<16x32xf32>
    %37 = arith.addf %35, %36 : vector<16x32xf32>
    %38 = vector.extract_strided_slice %31 {offsets = [0, 64], sizes = [16, 32], strides = [1, 1]} : vector<16x96xf32> to vector<16x32xf32>
    %39 = vector.broadcast %6 : vector<1x32xf32> to vector<16x32xf32>
    %40 = arith.addf %38, %39 : vector<16x32xf32>
    %41 = vector.extract_strided_slice %34 {offsets = [0, 0], sizes = [8, 32], strides = [1, 1]} : vector<16x32xf32> to vector<8x32xf32>
    %42 = vector.extract_strided_slice %37 {offsets = [0, 0], sizes = [8, 32], strides = [1, 1]} : vector<16x32xf32> to vector<8x32xf32>
    %43 = vector.extract_strided_slice %40 {offsets = [0, 0], sizes = [8, 32], strides = [1, 1]} : vector<16x32xf32> to vector<8x32xf32>
    %44 = vector.extract_strided_slice %41 {offsets = [0, 0], sizes = [8, 8], strides = [1, 1]} : vector<8x32xf32> to vector<8x8xf32>
    %45 = vector.extract_strided_slice %41 {offsets = [0, 8], sizes = [8, 8], strides = [1, 1]} : vector<8x32xf32> to vector<8x8xf32>
    %46 = vector.extract_strided_slice %41 {offsets = [0, 16], sizes = [8, 8], strides = [1, 1]} : vector<8x32xf32> to vector<8x8xf32>
    %47 = vector.extract_strided_slice %41 {offsets = [0, 24], sizes = [8, 8], strides = [1, 1]} : vector<8x32xf32> to vector<8x8xf32>
    %48 = vector.shape_cast %44 : vector<8x8xf32> to vector<1x8x8xf32>
    %49 = vector.shape_cast %45 : vector<8x8xf32> to vector<1x8x8xf32>
    %50 = vector.shape_cast %46 : vector<8x8xf32> to vector<1x8x8xf32>
    %51 = vector.shape_cast %47 : vector<8x8xf32> to vector<1x8x8xf32>
    %52 = tpu.concatenate %48, %49, %50, %51 in 0 : vector<1x8x8xf32>, vector<1x8x8xf32>, vector<1x8x8xf32>, vector<1x8x8xf32> -> vector<4x8x8xf32>
    %53 = vector.extract_strided_slice %42 {offsets = [0, 0], sizes = [8, 8], strides = [1, 1]} : vector<8x32xf32> to vector<8x8xf32>
    %54 = vector.extract_strided_slice %42 {offsets = [0, 8], sizes = [8, 8], strides = [1, 1]} : vector<8x32xf32> to vector<8x8xf32>
    %55 = vector.extract_strided_slice %42 {offsets = [0, 16], sizes = [8, 8], strides = [1, 1]} : vector<8x32xf32> to vector<8x8xf32>
    %56 = vector.extract_strided_slice %42 {offsets = [0, 24], sizes = [8, 8], strides = [1, 1]} : vector<8x32xf32> to vector<8x8xf32>
    %57 = vector.shape_cast %53 : vector<8x8xf32> to vector<1x8x8xf32>
    %58 = vector.shape_cast %54 : vector<8x8xf32> to vector<1x8x8xf32>
    %59 = vector.shape_cast %55 : vector<8x8xf32> to vector<1x8x8xf32>
    %60 = vector.shape_cast %56 : vector<8x8xf32> to vector<1x8x8xf32>
    %61 = tpu.concatenate %57, %58, %59, %60 in 0 : vector<1x8x8xf32>, vector<1x8x8xf32>, vector<1x8x8xf32>, vector<1x8x8xf32> -> vector<4x8x8xf32>
    %62 = vector.extract_strided_slice %43 {offsets = [0, 0], sizes = [8, 8], strides = [1, 1]} : vector<8x32xf32> to vector<8x8xf32>
    %63 = vector.extract_strided_slice %43 {offsets = [0, 8], sizes = [8, 8], strides = [1, 1]} : vector<8x32xf32> to vector<8x8xf32>
    %64 = vector.extract_strided_slice %43 {offsets = [0, 16], sizes = [8, 8], strides = [1, 1]} : vector<8x32xf32> to vector<8x8xf32>
    %65 = vector.extract_strided_slice %43 {offsets = [0, 24], sizes = [8, 8], strides = [1, 1]} : vector<8x32xf32> to vector<8x8xf32>
    %66 = vector.shape_cast %62 : vector<8x8xf32> to vector<1x8x8xf32>
    %67 = vector.shape_cast %63 : vector<8x8xf32> to vector<1x8x8xf32>
    %68 = vector.shape_cast %64 : vector<8x8xf32> to vector<1x8x8xf32>
    %69 = vector.shape_cast %65 : vector<8x8xf32> to vector<1x8x8xf32>
    %70 = tpu.concatenate %66, %67, %68, %69 in 0 : vector<1x8x8xf32>, vector<1x8x8xf32>, vector<1x8x8xf32>, vector<1x8x8xf32> -> vector<4x8x8xf32>
    "tpu.trace_start"() <{level = 10 : i32, message = "hqd,hkd->hqk"}> : () -> ()
    %cst_10 = arith.constant dense<0.000000e+00> : vector<4x8x8xf32>
    %71 = tpu.matmul %52, %61, %cst_10 {dimension_numbers = #tpu.dot_dimension_numbers<[2], [2], [1], [1], [0, 0, 0, 1, 1, 1], [0], [0]>} : vector<4x8x8xf32>, vector<4x8x8xf32>, vector<4x8x8xf32> -> vector<4x8x8xf32>
    "tpu.trace_stop"() : () -> ()
    %cst_11 = arith.constant 0.353553385 : f32
    %72 = vector.broadcast %cst_11 : f32 to vector<4x8x8xf32>
    %73 = arith.mulf %71, %72 : vector<4x8x8xf32>
    %cst_12 = arith.constant dense<0xFF800000> : vector<4x8xf32>
    %74 = vector.multi_reduction <maximumf>, %73, %cst_12 [2] : vector<4x8x8xf32> to vector<4x8xf32>
    %75 = vector.shape_cast %74 : vector<4x8xf32> to vector<4x8x1xf32>
    %76 = vector.broadcast %75 : vector<4x8x1xf32> to vector<4x8x8xf32>
    %77 = arith.subf %73, %76 : vector<4x8x8xf32>
    %78 = math.exp %77 : vector<4x8x8xf32>
    %cst_13 = arith.constant dense<0.000000e+00> : vector<4x8xf32>
    %79 = vector.multi_reduction <add>, %78, %cst_13 [2] : vector<4x8x8xf32> to vector<4x8xf32>
    %80 = vector.shape_cast %79 : vector<4x8xf32> to vector<4x8x1xf32>
    %81 = tpu.reciprocal %80 {approx = true} : vector<4x8x1xf32> -> vector<4x8x1xf32>
    %82 = vector.broadcast %81 : vector<4x8x1xf32> to vector<4x8x8xf32>
    %83 = arith.mulf %78, %82 : vector<4x8x8xf32>
    "tpu.trace_start"() <{level = 10 : i32, message = "hqk,hkd->hqd"}> : () -> ()
    %cst_14 = arith.constant dense<0.000000e+00> : vector<4x8x8xf32>
    %84 = tpu.matmul %83, %70, %cst_14 {dimension_numbers = #tpu.dot_dimension_numbers<[2], [1], [1], [2], [0, 0, 0, 1, 1, 2], [0], [0]>} : vector<4x8x8xf32>, vector<4x8x8xf32>, vector<4x8x8xf32> -> vector<4x8x8xf32>
    "tpu.trace_stop"() : () -> ()
    %85 = vector.extract_strided_slice %84 {offsets = [0, 0, 0], sizes = [1, 8, 8], strides = [1, 1, 1]} : vector<4x8x8xf32> to vector<1x8x8xf32>
    %86 = vector.shape_cast %85 : vector<1x8x8xf32> to vector<8x8xf32>
    %87 = vector.extract_strided_slice %84 {offsets = [1, 0, 0], sizes = [1, 8, 8], strides = [1, 1, 1]} : vector<4x8x8xf32> to vector<1x8x8xf32>
    %88 = vector.shape_cast %87 : vector<1x8x8xf32> to vector<8x8xf32>
    %89 = vector.extract_strided_slice %84 {offsets = [2, 0, 0], sizes = [1, 8, 8], strides = [1, 1, 1]} : vector<4x8x8xf32> to vector<1x8x8xf32>
    %90 = vector.shape_cast %89 : vector<1x8x8xf32> to vector<8x8xf32>
    %91 = vector.extract_strided_slice %84 {offsets = [3, 0, 0], sizes = [1, 8, 8], strides = [1, 1, 1]} : vector<4x8x8xf32> to vector<1x8x8xf32>
    %92 = vector.shape_cast %91 : vector<1x8x8xf32> to vector<8x8xf32>
    %93 = tpu.concatenate %86, %88, %90, %92 in 1 : vector<8x8xf32>, vector<8x8xf32>, vector<8x8xf32>, vector<8x8xf32> -> vector<8x32xf32>
    %94 = vector.extract_strided_slice %34 {offsets = [8, 0], sizes = [8, 32], strides = [1, 1]} : vector<16x32xf32> to vector<8x32xf32>
    %95 = vector.extract_strided_slice %37 {offsets = [8, 0], sizes = [8, 32], strides = [1, 1]} : vector<16x32xf32> to vector<8x32xf32>
    %96 = vector.extract_strided_slice %40 {offsets = [8, 0], sizes = [8, 32], strides = [1, 1]} : vector<16x32xf32> to vector<8x32xf32>
    %97 = vector.extract_strided_slice %94 {offsets = [0, 0], sizes = [8, 8], strides = [1, 1]} : vector<8x32xf32> to vector<8x8xf32>
    %98 = vector.extract_strided_slice %94 {offsets = [0, 8], sizes = [8, 8], strides = [1, 1]} : vector<8x32xf32> to vector<8x8xf32>
    %99 = vector.extract_strided_slice %94 {offsets = [0, 16], sizes = [8, 8], strides = [1, 1]} : vector<8x32xf32> to vector<8x8xf32>
    %100 = vector.extract_strided_slice %94 {offsets = [0, 24], sizes = [8, 8], strides = [1, 1]} : vector<8x32xf32> to vector<8x8xf32>
    %101 = vector.shape_cast %97 : vector<8x8xf32> to vector<1x8x8xf32>
    %102 = vector.shape_cast %98 : vector<8x8xf32> to vector<1x8x8xf32>
    %103 = vector.shape_cast %99 : vector<8x8xf32> to vector<1x8x8xf32>
    %104 = vector.shape_cast %100 : vector<8x8xf32> to vector<1x8x8xf32>
    %105 = tpu.concatenate %101, %102, %103, %104 in 0 : vector<1x8x8xf32>, vector<1x8x8xf32>, vector<1x8x8xf32>, vector<1x8x8xf32> -> vector<4x8x8xf32>
    %106 = vector.extract_strided_slice %95 {offsets = [0, 0], sizes = [8, 8], strides = [1, 1]} : vector<8x32xf32> to vector<8x8xf32>
    %107 = vector.extract_strided_slice %95 {offsets = [0, 8], sizes = [8, 8], strides = [1, 1]} : vector<8x32xf32> to vector<8x8xf32>
    %108 = vector.extract_strided_slice %95 {offsets = [0, 16], sizes = [8, 8], strides = [1, 1]} : vector<8x32xf32> to vector<8x8xf32>
    %109 = vector.extract_strided_slice %95 {offsets = [0, 24], sizes = [8, 8], strides = [1, 1]} : vector<8x32xf32> to vector<8x8xf32>
    %110 = vector.shape_cast %106 : vector<8x8xf32> to vector<1x8x8xf32>
    %111 = vector.shape_cast %107 : vector<8x8xf32> to vector<1x8x8xf32>
    %112 = vector.shape_cast %108 : vector<8x8xf32> to vector<1x8x8xf32>
    %113 = vector.shape_cast %109 : vector<8x8xf32> to vector<1x8x8xf32>
    %114 = tpu.concatenate %110, %111, %112, %113 in 0 : vector<1x8x8xf32>, vector<1x8x8xf32>, vector<1x8x8xf32>, vector<1x8x8xf32> -> vector<4x8x8xf32>
    %115 = vector.extract_strided_slice %96 {offsets = [0, 0], sizes = [8, 8], strides = [1, 1]} : vector<8x32xf32> to vector<8x8xf32>
    %116 = vector.extract_strided_slice %96 {offsets = [0, 8], sizes = [8, 8], strides = [1, 1]} : vector<8x32xf32> to vector<8x8xf32>
    %117 = vector.extract_strided_slice %96 {offsets = [0, 16], sizes = [8, 8], strides = [1, 1]} : vector<8x32xf32> to vector<8x8xf32>
    %118 = vector.extract_strided_slice %96 {offsets = [0, 24], sizes = [8, 8], strides = [1, 1]} : vector<8x32xf32> to vector<8x8xf32>
    %119 = vector.shape_cast %115 : vector<8x8xf32> to vector<1x8x8xf32>
    %120 = vector.shape_cast %116 : vector<8x8xf32> to vector<1x8x8xf32>
    %121 = vector.shape_cast %117 : vector<8x8xf32> to vector<1x8x8xf32>
    %122 = vector.shape_cast %118 : vector<8x8xf32> to vector<1x8x8xf32>
    %123 = tpu.concatenate %119, %120, %121, %122 in 0 : vector<1x8x8xf32>, vector<1x8x8xf32>, vector<1x8x8xf32>, vector<1x8x8xf32> -> vector<4x8x8xf32>
    "tpu.trace_start"() <{level = 10 : i32, message = "hqd,hkd->hqk"}> : () -> ()
    %cst_15 = arith.constant dense<0.000000e+00> : vector<4x8x8xf32>
    %124 = tpu.matmul %105, %114, %cst_15 {dimension_numbers = #tpu.dot_dimension_numbers<[2], [2], [1], [1], [0, 0, 0, 1, 1, 1], [0], [0]>} : vector<4x8x8xf32>, vector<4x8x8xf32>, vector<4x8x8xf32> -> vector<4x8x8xf32>
    "tpu.trace_stop"() : () -> ()
    %cst_16 = arith.constant 0.353553385 : f32
    %125 = vector.broadcast %cst_16 : f32 to vector<4x8x8xf32>
    %126 = arith.mulf %124, %125 : vector<4x8x8xf32>
    %cst_17 = arith.constant dense<0xFF800000> : vector<4x8xf32>
    %127 = vector.multi_reduction <maximumf>, %126, %cst_17 [2] : vector<4x8x8xf32> to vector<4x8xf32>
    %128 = vector.shape_cast %127 : vector<4x8xf32> to vector<4x8x1xf32>
    %129 = vector.broadcast %128 : vector<4x8x1xf32> to vector<4x8x8xf32>
    %130 = arith.subf %126, %129 : vector<4x8x8xf32>
    %131 = math.exp %130 : vector<4x8x8xf32>
    %cst_18 = arith.constant dense<0.000000e+00> : vector<4x8xf32>
    %132 = vector.multi_reduction <add>, %131, %cst_18 [2] : vector<4x8x8xf32> to vector<4x8xf32>
    %133 = vector.shape_cast %132 : vector<4x8xf32> to vector<4x8x1xf32>
    %134 = tpu.reciprocal %133 {approx = true} : vector<4x8x1xf32> -> vector<4x8x1xf32>
    %135 = vector.broadcast %134 : vector<4x8x1xf32> to vector<4x8x8xf32>
    %136 = arith.mulf %131, %135 : vector<4x8x8xf32>
    "tpu.trace_start"() <{level = 10 : i32, message = "hqk,hkd->hqd"}> : () -> ()
    %cst_19 = arith.constant dense<0.000000e+00> : vector<4x8x8xf32>
    %137 = tpu.matmul %136, %123, %cst_19 {dimension_numbers = #tpu.dot_dimension_numbers<[2], [1], [1], [2], [0, 0, 0, 1, 1, 2], [0], [0]>} : vector<4x8x8xf32>, vector<4x8x8xf32>, vector<4x8x8xf32> -> vector<4x8x8xf32>
    "tpu.trace_stop"() : () -> ()
    %138 = vector.extract_strided_slice %137 {offsets = [0, 0, 0], sizes = [1, 8, 8], strides = [1, 1, 1]} : vector<4x8x8xf32> to vector<1x8x8xf32>
    %139 = vector.shape_cast %138 : vector<1x8x8xf32> to vector<8x8xf32>
    %140 = vector.extract_strided_slice %137 {offsets = [1, 0, 0], sizes = [1, 8, 8], strides = [1, 1, 1]} : vector<4x8x8xf32> to vector<1x8x8xf32>
    %141 = vector.shape_cast %140 : vector<1x8x8xf32> to vector<8x8xf32>
    %142 = vector.extract_strided_slice %137 {offsets = [2, 0, 0], sizes = [1, 8, 8], strides = [1, 1, 1]} : vector<4x8x8xf32> to vector<1x8x8xf32>
    %143 = vector.shape_cast %142 : vector<1x8x8xf32> to vector<8x8xf32>
    %144 = vector.extract_strided_slice %137 {offsets = [3, 0, 0], sizes = [1, 8, 8], strides = [1, 1, 1]} : vector<4x8x8xf32> to vector<1x8x8xf32>
    %145 = vector.shape_cast %144 : vector<1x8x8xf32> to vector<8x8xf32>
    %146 = tpu.concatenate %139, %141, %143, %145 in 1 : vector<8x8xf32>, vector<8x8xf32>, vector<8x8xf32>, vector<8x8xf32> -> vector<8x32xf32>
    %147 = tpu.concatenate %93, %146 in 0 : vector<8x32xf32>, vector<8x32xf32> -> vector<16x32xf32>
    %c0_20 = arith.constant 0 : index
    %c0_21 = arith.constant 0 : index
    %148 = vector.load %arg2[%c0_20, %c0_21] : memref<32x32xf32, #tpu.memory_space<vmem>>, vector<32x32xf32>
    %cst_22 = arith.constant dense<0.000000e+00> : vector<16x32xf32>
    %149 = tpu.matmul %147, %148, %cst_22 {dimension_numbers = #tpu.dot_dimension_numbers<[1], [0], [0], [1], [0, 0, 1, 1], [], []>} : vector<16x32xf32>, vector<32x32xf32>, vector<16x32xf32> -> vector<16x32xf32>
    %150 = vector.broadcast %7 : vector<1x32xf32> to vector<16x32xf32>
    %151 = arith.addf %149, %150 : vector<16x32xf32>
    %c0_23 = arith.constant 0 : index
    %c0_24 = arith.constant 0 : index
    %152 = vector.load %arg4[%c0_23, %c0_24] : memref<16x32xf32, #tpu.memory_space<vmem>>, vector<16x32xf32>
    tpu.vector_store %arg4[%c0_23, %c0_24], %151 {strides = array<i32>} : memref<16x32xf32, #tpu.memory_space<vmem>>, vector<16x32xf32>,
    return
  }
}

</mosaic_0001>

<bundles_post_ra>
// kernel: tpu_custom_call.1
= control target key start
LH: loop header
LB: loop body
LE: loop exit
PB: predicated region body
PF: predicated region fallthrough
CT: control target
= control target key end

     0   :  { %9 = vsyncpa [#allocation3], 0  ;;  %s2315_s0 = inlined_call_operand.hbm [shape: f32[16,32], index: 0, kind: input, shape index: {}]   ;;  %s2316_s1 = inlined_call_operand.hbm [shape: f32[32,96], index: 1, kind: input, shape index: {}]   ;;  %s2317_s2 = inlined_call_operand.hbm [shape: f32[32,32], index: 2, kind: input, shape index: {}]   ;;  %s2318_s3 = inlined_call_operand.hbm [shape: f32[6,32], index: 3, kind: input, shape index: {}]   ;;  %s2319_s4 = inlined_call_operand.hbm [shape: f32[16,32], index: 4, kind: output, shape index: {}]  }
   0x1   :  { %10 = vsyncpa [#allocation6], 0 }
   0x2   :  { %11 = vsyncpa [#allocation9], 0 }
   0x3   :  { %12 = vsyncpa [#allocation4], 0  ;;  %s2057_s15 = smov [#allocation5]   ;;  %s2058_s17 = smov [#allocation2]  }
   0x4   :  { %s30_s16 = sshll.u32 %s2057_s15, 4  ;;  %s18_s18 = sshll.u32 %s2058_s17, 4  ;;  %s31_s16 = int_to_ptr.vmem [resolvable:$true] %s30_s16  ;;  %s19_s18 = int_to_ptr.vmem [resolvable:$true] %s18_s18 }
   0x5   :  { %s1957_s19 = scalar_lea.vmem %s31_s16, 512  ;;  %p1962_p1 = scmp.lt.s32.totalorder %s31_s16, %s31_s16 }
   0x6   :  { %p1958_p0 = scmp.ne.s32.totalorder %s31_s16, %s1957_s19  ;;  %p1963_p2 = scmp.lt.s32.totalorder %s1957_s19, %s1957_s19 }
   0x8   :  { %p1964_p3 = por %p1963_p2, %p1962_p1 }
   0xa   :  { %p1965_p4 = pnand %p1964_p3, %p1958_p0 }
   0xc   :  { %1968 = shalt.err (!%p1965_p4)
}
   0xd   :  { %s2059_s20 = smov 128   ;;  %s2060_s21 = smov 8  }
   0xe   :  { %36 = dma.hbm_to_vmem [thread:$0]  %s2316_s1, 512, %s31_s16, [#allocation6], %s2059_s20, %s2059_s20, %s2060_s21  }
   0xf   :  { %s1977_s24 = scalar_lea.vmem %s19_s18, 256  ;;  %p1982_p6 = scmp.lt.s32.totalorder %s19_s18, %s19_s18 }
  0x10   :  { %p1978_p5 = scmp.ne.s32.totalorder %s19_s18, %s1977_s24  ;;  %p1983_p7 = scmp.lt.s32.totalorder %s1977_s24, %s1977_s24 }
  0x12   :  { %p1984_p8 = por %p1983_p7, %p1982_p6 }
  0x14   :  { %p1985_p9 = pnand %p1984_p8, %p1978_p5 }
  0x16   :  { %1988 = shalt.err (!%p1985_p9)
}
  0x17   :  { %24 = dma.hbm_to_vmem [thread:$0]  %s2315_s0, 256, %s19_s18, [#allocation3], %s2059_s20, %s2059_s20, %s2060_s21  }
  0x18   :  { %s2061_s27 = smov [#allocation7]   ;;  %s2062_s29 = smov [#allocation8]  }
  0x19   :  { %s42_s28 = sshll.u32 %s2061_s27, 4  ;;  %s55_s30 = sshll.u32 %s2062_s29, 4  ;;  %s43_s28 = int_to_ptr.vmem [resolvable:$true] %s42_s28  ;;  %s56_s30 = int_to_ptr.vmem [resolvable:$true] %s55_s30 }
  0x1a   :  { %s1997_s1 = scalar_lea.vmem %s43_s28, 512  ;;  %p2002_p11 = scmp.lt.s32.totalorder %s43_s28, %s43_s28 }
  0x1b   :  { %p1998_p10 = scmp.ne.s32.totalorder %s43_s28, %s1997_s1  ;;  %p2003_p12 = scmp.lt.s32.totalorder %s1997_s1, %s1997_s1 }
  0x1d   :  { %p2004_p13 = por %p2003_p12, %p2002_p11 }
  0x1f   :  { %p2005_p0 = pnand %p2004_p13, %p1998_p10 }
  0x21   :  { %2008 = shalt.err (!%p2005_p0)
}
  0x22   :  { %48 = dma.hbm_to_vmem [thread:$0]  %s2317_s2, 512, %s43_s28, [#allocation6], %s2059_s20, %s2059_s20, %s2060_s21  }
  0x23   :  { %s2017_s0 = scalar_lea.vmem %s56_s30, 128  ;;  %p2022_p2 = scmp.lt.s32.totalorder %s56_s30, %s56_s30 }
  0x24   :  { %p2018_p1 = scmp.ne.s32.totalorder %s56_s30, %s2017_s0  ;;  %p2023_p3 = scmp.lt.s32.totalorder %s2017_s0, %s2017_s0 }
  0x26   :  { %p2024_p4 = por %p2023_p3, %p2022_p2 }
  0x28   :  { %p2025_p5 = pnand %p2024_p4, %p2018_p1 }
  0x2a   :  { %2028 = shalt.err (!%p2025_p5)
}
  0x2b   :  { %58 = dma.hbm_to_vmem [thread:$0]  %s2318_s3, 128, %s56_s30, [#allocation9]  }
  0x2c   :  { %2049 = dma.done.wait [#allocation3], 256  }
  0x2d   :  { %2050 = vsyncadd [#allocation3], 4294967040 }
  0x2e   :  { %2051 = dma.done.wait [#allocation6], 1024  }
  0x2f   :  { %2052 = vsyncadd [#allocation6], 4294966272 }
  0x30   :  { %2053 = dma.done.wait [#allocation9], 128  }
  0x31   :  { %2054 = vsyncadd [#allocation9], 4294967168  ;;  %vm74_vm0 = vcmask 261120   ;;  %v71_v0 = vld [vmem:[#allocation2] sm:$0xff]  ;;  %v72_v1 = vld [vmem:[#allocation2 + $0x8] sm:$0xff]  ;;  %v102_v17 = vlaneseq  ;;  %s2063_s2 = smov 32  }
  0x32   :  { %v75_v2 = vsel %vm74_vm0, %v71_v0, 0.0  ;;  %v78_v3 = vsel %vm74_vm0, %v72_v1, 0.0  ;;  %v117_v14 = vld [vmem:[#allocation5 + $0x18] sm:$0xff]  ;;  %v116_v15 = vld [vmem:[#allocation5 + $0x10] sm:$0xff]  ;;  %v115_v16 = vld [vmem:[#allocation5 + $0x8] sm:$0xff]  ;;  %v2064_v41 = vmov 0.0  }
  0x33   :  { %76 = vadd.xlane.f32.xlu0 %v75_v2  ;;  %1794 = vmatprep.subr.mxu0 %v117_v14  ;;  %v114_v18 = vld [vmem:[#allocation5] sm:$0xff]  ;;  %v2124_v19 = vshrl.u32 %v102_v17, 7  ;;  %vm2065_vm1 = vmmov 0   ;;  %s2066_s3 = smov 96   ;;  %s2067_s9 = smov 120   ;;  %vm248_vm2 = vcmask 64512  }
  0x34   :  { %1795 = vmatpush3.msra.mxu0 %v117_v14  ;;  %v2127_v21 = vld [vmem:[#allocation8] sm:$0x3f]  ;;  %1805 = vmatprep.subr.mxu1 %v2064_v41  ;;  %s2068_s10 = smov 112   ;;  %s2069_s11 = smov 104   ;;  %vm916_vm3 = vcmask 130048   ;;  %vm918_vm4 = vcmask 195584  }
  0x35   :  { %1796 = vmatprep.subr.mxu0 %v116_v15  ;;  %v207_v20 = vsub.s32 3, %v2124_v19  ;;  %v104_v29 = vsub.s32 0, %v2124_v19  ;;  %v110_v30 = vsub.s32 1, %v2124_v19  ;;  %1807 = vmatprep.mubr.msk.f32.mxu1 %vm2065_vm1, %v2064_v41  ;;  %v201_v43 = vsub.s32 2, %v2124_v19  ;;  %s2070_s12 = smov 64   ;;  %s2071_s13 = smov 16  }
  0x36   :  { %1797 = vmatpush3.msra.mxu0 %v116_v15  ;;  %v217_v52 = vsub.s32 4, %v2124_v19  ;;  %s2072_s14 = smov 24   ;;  %s2073_s15 = smov [#allocation10]  }
  0x37   :  { %79 = vadd.xlane.f32.xlu0 %v78_v3  ;;  %1798 = vmatprep.subr.mxu0 %v115_v16  ;;  %v208_v22 = vrot.slane %v2127_v21, %v207_v20  ;;  %v105_v31 = vrot.slane %v2127_v21, %v104_v29  ;;  %v111_v34 = vrot.slane %v2127_v21, %v110_v30  ;;  %s1708_s16 = sshll.u32 %s2073_s15, 4  ;;  %s1709_s16 = int_to_ptr.vmem [resolvable:$true] %s1708_s16 }
  0x38   :  { %1799 = vmatpush3.msra.mxu0 %v115_v16  ;;  %v2152_v47 = vrot.slane %v2127_v21, %v201_v43  ;;  %v218_v54 = vrot.slane %v2127_v21, %v217_v52  ;;  %s2029_s17 = scalar_lea.vmem %s1709_s16, 256  ;;  %p2034_p7 = scmp.lt.s32.totalorder %s1709_s16, %s1709_s16 }
  0x39   :  { %1800 = vmatprep.subr.mxu0 %v114_v18  ;;  %p2030_p6 = scmp.ne.s32.totalorder %s1709_s16, %s2029_s17  ;;  %p2035_p8 = scmp.lt.s32.totalorder %s2029_s17, %s2029_s17 }
  0x3a   :  { %1801 = vmatpush3.msra.mxu0 %v114_v18 }
  0x3b   :  { %1825 = vmatprep.subr.mxu0 %v2064_v41  ;;  %p2036_p9 = por %p2035_p8, %p2034_p7 }
  0x3d   :  { %p2037_p10 = pnand %p2036_p9, %p2030_p6 }
  0x4d   :  { %210 = vrot.lane.b32.xlu0 %v208_v22, %s2063_s2 }
  0xbc   :  { %v77_v4 = vpop.xlane.xlu0 %76 }
  0xbd   :  { %v82_v5 = vmul.f32 0.03125, %v77_v4 }
  0xbf   :  { %v84_v6 = vsub.f32 %v71_v0, %v82_v5 }
  0xc0   :  { %v80_v7 = vpop.xlane.xlu0 %79 }
  0xc1   :  { %v83_v8 = vmul.f32 0.03125, %v80_v7  ;;  %v86_v9 = vmul.f32 %v84_v6, %v84_v6 }
  0xc3   :  { %v85_v10 = vsub.f32 %v72_v1, %v83_v8  ;;  %v88_v11 = vsel %vm74_vm0, %v86_v9, 0.0 }
  0xc4   :  { %89 = vadd.xlane.f32.xlu1 %v88_v11  ;;  %v2145_v44 = vpop.permute.xlu0 %210 }
  0xc5   :  { %v87_v12 = vmul.f32 %v85_v10, %v85_v10 }
  0xc7   :  { %v91_v13 = vsel %vm74_vm0, %v87_v12, 0.0 }
  0xc8   :  { %92 = vadd.xlane.f32.xlu1 %v91_v13 }
 0x14d   :  { %v90_v23 = vpop.xlane.xlu1 %89 }
 0x14e   :  { %v94_v24 = vmul.f32 0.03125, %v90_v23 }
 0x150   :  { %v96_v25 = vadd.f32 1e-05, %v94_v24 }
 0x151   :  { %v93_v26 = vpop.xlane.xlu1 %92 }
 0x152   :  { %1913 = vrsqrt.f32 %v96_v25  ;;  %v95_v27 = vmul.f32 0.03125, %v93_v26 }
 0x154   :  { %v97_v28 = vadd.f32 1e-05, %v95_v27 }
 0x156   :  { %1915 = vrsqrt.f32 %v97_v28 }
 0x15f   :  { %v1914_v32 = vpop.eup %1913 }
 0x160   :  { %v100_v33 = vmul.f32 %v1914_v32, %v84_v6 }
 0x162   :  { %v106_v35 = vmul.f32 %v105_v31, %v100_v33 }
 0x163   :  { %v1916_v36 = vpop.eup %1915 }
 0x164   :  { %v101_v37 = vmul.f32 %v1916_v36, %v85_v10  ;;  %v112_v38 = vadd.f32 %v111_v34, %v106_v35 }
 0x166   :  { %v107_v39 = vmul.f32 %v105_v31, %v101_v37  ;;  %1802 = vmatprep.mubr.msk.f32.mxu0 %vm74_vm0, %v112_v38 }
 0x168   :  { %v113_v40 = vadd.f32 %v111_v34, %v107_v39 }
 0x16a   :  { %1803 = vmatmul.mubr.msk.f32.vlgmr.msra.gmra.mxu0 %vm74_vm0, %v113_v40 }
 0x16b   :  { %1827 = vmatprep.mubr.msk.f32.mxu0 %vm2065_vm1, %v2064_v41 }
 0x22a   :  { %v2142_v42 = vpop.f32.mrf.mxu0 }
 0x22b   :  { %v214_v15 = vadd.f32 %v2142_v42, %v2145_v44 }
 0x22c   :  { %v2147_v45 = vpop.f32.mrf.mxu0 }
 0x22d   :  { %v213_v46 = vadd.f32 %v2145_v44, %v2147_v45  ;;  %v203_v48 = vadd.f32 %v2152_v47, %v2147_v45  ;;  %v204_v44 = vadd.f32 %v2142_v42, %v2152_v47 }
 0x22f   :  { %246 = vrot.lane.b32.xlu0 %v213_v46, %s2066_s3  ;;  %233 = vrot.lane.b32.xlu1 %v213_v46, %s2067_s9 }
 0x233   :  { %226 = vrot.lane.b32.xlu0 %v203_v48, %s2067_s9  ;;  %235 = vrot.lane.b32.xlu1 %v213_v46, %s2068_s10 }
 0x237   :  { %228 = vrot.lane.b32.xlu0 %v203_v48, %s2068_s10  ;;  %237 = vrot.lane.b32.xlu1 %v213_v46, %s2069_s11 }
 0x23b   :  { %230 = vrot.lane.b32.xlu0 %v203_v48, %s2069_s11 }
 0x2a1   :  { %v247_v49 = vpop.permute.xlu0 %246  ;;  %v234_v50 = vpop.permute.xlu1 %233 }
 0x2a2   :  { %1806 = vmatpush3.xpose.msk.msra.mxu1 %vm248_vm2, %v247_v49  ;;  %323 = vrot.lane.b32.xlu1 %v234_v50, %s2066_s3 }
 0x2a3   :  { %1810 = vmatprep.subr.mxu1 %v2064_v41 }
 0x2a5   :  { %1808 = vmatmul.mubr.msk.f32.vlgmr.msra.gmra.mxu1 %vm248_vm2, %v203_v48  ;;  %v236_v51 = vpop.permute.xlu1 %235  ;;  %v227_v55 = vpop.permute.xlu0 %226 }
 0x2a6   :  { %399 = vrot.lane.b32.xlu1 %v236_v51, %s2066_s3  ;;  %1812 = vmatprep.mubr.msk.f32.mxu1 %vm2065_vm1, %v2064_v41 }
 0x2a9   :  { %v238_v53 = vpop.permute.xlu1 %237  ;;  %v229_v58 = vpop.permute.xlu0 %228 }
 0x2aa   :  { %475 = vrot.lane.b32.xlu1 %v238_v53, %s2066_s3 }
 0x2ad   :  { %v231_v60 = vpop.permute.xlu0 %230 }
 0x2ae   :  { %220 = vrot.lane.b32.xlu1 %v218_v54, %s2070_s12 }
 0x314   :  { %v324_v56 = vpop.permute.xlu1 %323 }
 0x315   :  { %1811 = vmatpush3.xpose.msk.msra.mxu1 %vm248_vm2, %v324_v56 }
 0x316   :  { %1815 = vmatprep.subr.mxu1 %v2064_v41 }
 0x318   :  { %1813 = vmatmul.mubr.msk.f32.vlgmr.msra.gmra.mxu1 %vm248_vm2, %v227_v55  ;;  %v400_v57 = vpop.permute.xlu1 %399 }
 0x319   :  { %1816 = vmatpush3.xpose.msk.msra.mxu1 %vm248_vm2, %v400_v57  ;;  %1817 = vmatprep.mubr.msk.f32.mxu1 %vm2065_vm1, %v2064_v41 }
 0x31a   :  { %1820 = vmatprep.subr.mxu1 %v2064_v41 }
 0x31c   :  { %1818 = vmatmul.mubr.msk.f32.vlgmr.msra.gmra.mxu1 %vm248_vm2, %v229_v58  ;;  %v476_v59 = vpop.permute.xlu1 %475 }
 0x31d   :  { %1821 = vmatpush3.xpose.msk.msra.mxu1 %vm248_vm2, %v476_v59  ;;  %1822 = vmatprep.mubr.msk.f32.mxu1 %vm2065_vm1, %v2064_v41 }
 0x31e   :  { %1830 = vmatprep.subr.mxu1 %v2064_v41 }
 0x320   :  { %1823 = vmatmul.mubr.msk.f32.vlgmr.msra.gmra.mxu1 %vm248_vm2, %v231_v60  ;;  %v2193_v13 = vpop.permute.xlu1 %220 }
 0x321   :  { %1832 = vmatprep.mubr.msk.f32.mxu1 %vm2065_vm1, %v2064_v41  ;;  %v223_v14 = vadd.f32 %v2193_v13, %v2147_v45 }
 0x365   :  { %v319_v61 = vpop.f32.mrf.mxu1 }
 0x366   :  { %v551_v62 = vmul.f32 0.35355338, %v319_v61 }
 0x367   :  { %v1809_v63 = vpop.f32.mrf.mxu1 }
 0x368   :  { %v555_v0 = vsel %vm248_vm2, %v551_v62, -inf }
 0x369   :  { %556 = vmax.xlane.f32.xlu0 %v555_v0 }
 0x3d8   :  { %v395_v1 = vpop.f32.mrf.mxu1 }
 0x3d9   :  { %v552_v2 = vmul.f32 0.35355338, %v395_v1 }
 0x3da   :  { %v1814_v3 = vpop.f32.mrf.mxu1 }
 0x3db   :  { %v558_v4 = vsel %vm248_vm2, %v552_v2, -inf }
 0x3dc   :  { %559 = vmax.xlane.f32.xlu1 %v558_v4  ;;  %v471_v5 = vpop.f32.mrf.mxu1 }
 0x3dd   :  { %v553_v6 = vmul.f32 0.35355338, %v471_v5 }
 0x3de   :  { %v1819_v7 = vpop.f32.mrf.mxu1 }
 0x3df   :  { %v561_v8 = vsel %vm248_vm2, %v553_v6, -inf }
 0x3e0   :  { %562 = vmax.xlane.f32.xlu0 %v561_v8  ;;  %v547_v9 = vpop.f32.mrf.mxu1 }
 0x3e1   :  { %v554_v10 = vmul.f32 0.35355338, %v547_v9 }
 0x3e2   :  { %v1824_v11 = vpop.f32.mrf.mxu1 }
 0x3e3   :  { %v564_v12 = vsel %vm248_vm2, %v554_v10, -inf }
 0x3e4   :  { %565 = vmax.xlane.f32.xlu0 %v564_v12 }
 0x3ed   :  { %242 = vrot.lane.b32.xlu1 %v223_v14, %s2068_s10 }
 0x3f1   :  { %244 = vrot.lane.b32.xlu1 %v223_v14, %s2069_s11 }
 0x3f2   :  { %v557_v16 = vpop.xlane.xlu0 %556 }
 0x3f3   :  { %v567_v17 = vsub.f32 %v551_v62, %v557_v16 }
 0x3f5   :  { %928 = vrot.lane.b32.xlu1 %v214_v15, %s2067_s9  ;;  %v571_v18 = vmul.f32 1.442695, %v567_v17 }
 0x3f7   :  { %1917 = vpow2.f32 %v571_v18 }
 0x3f9   :  { %932 = vrot.lane.b32.xlu1 %v214_v15, %s2069_s11 }
 0x3fa   :  { %240 = vrot.lane.b32.xlu0 %v223_v14, %s2067_s9 }
 0x3fe   :  { %930 = vrot.lane.b32.xlu0 %v214_v15, %s2068_s10 }
 0x402   :  { %599 = vrot.lane.b32.xlu0 %v223_v14, %s2070_s12 }
 0x404   :  { %v1918_v20 = vpop.eup %1917 }
 0x405   :  { %v579_v22 = vsel %vm248_vm2, %v1918_v20, 0.0 }
 0x406   :  { %941 = vrot.lane.b32.xlu0 %v214_v15, %s2066_s3  ;;  %v224_v15 = vadd.f32 %v2142_v42, %v2193_v13 }
 0x425   :  { %580 = vadd.xlane.f32.xlu0 %v579_v22 }
 0x465   :  { %v560_v25 = vpop.xlane.xlu1 %559 }
 0x466   :  { %v568_v40 = vsub.f32 %v552_v2, %v560_v25 }
 0x468   :  { %v573_v43 = vmul.f32 1.442695, %v568_v40 }
 0x469   :  { %v563_v23 = vpop.xlane.xlu0 %562  ;;  %v243_v30 = vpop.permute.xlu1 %242 }
 0x46a   :  { %v569_v24 = vsub.f32 %v553_v6, %v563_v23 }
 0x46c   :  { %v575_v26 = vmul.f32 1.442695, %v569_v24 }
 0x46d   :  { %v566_v27 = vpop.xlane.xlu0 %565  ;;  %v245_v33 = vpop.permute.xlu1 %244 }
 0x46e   :  { %1919 = vpow2.f32 %v575_v26  ;;  %v570_v28 = vsub.f32 %v554_v10, %v566_v27 }
 0x470   :  { %v577_v29 = vmul.f32 1.442695, %v570_v28 }
 0x471   :  { %v241_v31 = vpop.permute.xlu0 %240  ;;  %v929_v37 = vpop.permute.xlu1 %928 }
 0x472   :  { %1921 = vpow2.f32 %v577_v29  ;;  %675 = vrot.lane.b32.xlu1 %v241_v31, %s2070_s12 }
 0x473   :  { %1923 = vpow2.f32 %v573_v43 }
 0x475   :  { %v931_v32 = vpop.permute.xlu0 %930  ;;  %v933_v45 = vpop.permute.xlu1 %932 }
 0x476   :  { %751 = vrot.lane.b32.xlu1 %v243_v30, %s2070_s12 }
 0x479   :  { %v600_v34 = vpop.permute.xlu0 %599 }
 0x47a   :  { %1826 = vmatpush3.msra.mxu0 %v600_v34  ;;  %827 = vrot.lane.b32.xlu1 %v245_v33, %s2070_s12 }
 0x47b   :  { %v1920_v35 = vpop.eup %1919  ;;  %1835 = vmatprep.subr.mxu0 %v2064_v41 }
 0x47c   :  { %v585_v36 = vsel %vm248_vm2, %v1920_v35, 0.0 }
 0x47d   :  { %586 = vadd.xlane.f32.xlu0 %v585_v36  ;;  %v942_v49 = vpop.permute.xlu0 %941 }
 0x47e   :  { %1017 = vrot.lane.b32.xlu1 %v929_v37, %s2066_s3 }
 0x47f   :  { %v1922_v38 = vpop.eup %1921 }
 0x480   :  { %v588_v39 = vsel %vm248_vm2, %v1922_v38, 0.0  ;;  %v1924_v46 = vpop.eup %1923 }
 0x481   :  { %589 = vadd.xlane.f32.xlu0 %v588_v39  ;;  %v582_v48 = vsel %vm248_vm2, %v1924_v46, 0.0 }
 0x497   :  { %921 = vrot.lane.b32.xlu0 %v204_v44, %s2067_s9 }
 0x49b   :  { %1169 = vrot.lane.b32.xlu0 %v933_v45, %s2066_s3 }
 0x49f   :  { %925 = vrot.lane.b32.xlu0 %v204_v44, %s2069_s11 }
 0x4a2   :  { %583 = vadd.xlane.f32.xlu1 %v582_v48 }
 0x4ae   :  { %v581_v50 = vpop.xlane.xlu0 %580 }
 0x4af   :  { %1925 = vrcp.f32 %v581_v50 }
 0x4b3   :  { %1093 = vrot.lane.b32.xlu1 %v931_v32, %s2066_s3 }
 0x4b7   :  { %923 = vrot.lane.b32.xlu1 %v204_v44, %s2068_s10 }
 0x4bc   :  { %v1926_v51 = vpop.eup %1925 }
 0x4bd   :  { %v595_v47 = vmul.f32 %v1926_v51, %v1918_v20 }
 0x4bf   :  { %1828 = vmatmul.mubr.msk.f32.vlgmr.msra.gmra.mxu0 %vm248_vm2, %v595_v47 }
 0x4c0   :  { %1837 = vmatprep.mubr.msk.f32.mxu0 %vm2065_vm1, %v2064_v41 }
 0x4e4   :  { %v676_v52 = vpop.permute.xlu1 %675 }
 0x4e5   :  { %1831 = vmatpush3.msra.mxu1 %v676_v52 }
 0x4e6   :  { %1840 = vmatprep.subr.mxu1 %v2064_v41 }
 0x4e8   :  { %v752_v53 = vpop.permute.xlu1 %751 }
 0x4e9   :  { %1836 = vmatpush3.msra.mxu0 %v752_v53 }
 0x4ea   :  { %1845 = vmatprep.subr.mxu0 %v2064_v41 }
 0x4ec   :  { %v828_v57 = vpop.permute.xlu1 %827 }
 0x4f0   :  { %v1018_v58 = vpop.permute.xlu1 %1017 }
 0x506   :  { %v587_v54 = vpop.xlane.xlu0 %586 }
 0x507   :  { %1927 = vrcp.f32 %v587_v54 }
 0x50a   :  { %v590_v59 = vpop.xlane.xlu0 %589 }
 0x50e   :  { %v922_v2 = vpop.permute.xlu0 %921 }
 0x512   :  { %v1170_v4 = vpop.permute.xlu0 %1169 }
 0x514   :  { %v1928_v55 = vpop.eup %1927 }
 0x515   :  { %v597_v56 = vmul.f32 %v1928_v55, %v1920_v35 }
 0x516   :  { %v926_v5 = vpop.permute.xlu0 %925 }
 0x517   :  { %1838 = vmatmul.mubr.msk.f32.vlgmr.msra.gmra.mxu0 %vm248_vm2, %v597_v56 }
 0x518   :  { %1846 = vmatpush3.xpose.msk.msra.mxu0 %vm248_vm2, %v942_v49  ;;  %1847 = vmatprep.mubr.msk.f32.mxu0 %vm2065_vm1, %v2064_v41 }
 0x519   :  { %1855 = vmatprep.subr.mxu0 %v2064_v41 }
 0x51b   :  { %1848 = vmatmul.mubr.msk.f32.vlgmr.msra.gmra.mxu0 %vm248_vm2, %v204_v44 }
 0x51c   :  { %1857 = vmatprep.mubr.msk.f32.mxu0 %vm2065_vm1, %v2064_v41 }
 0x52b   :  { %v584_v60 = vpop.xlane.xlu1 %583 }
 0x52c   :  { %1929 = vrcp.f32 %v584_v60 }
 0x52d   :  { %1931 = vrcp.f32 %v590_v59 }
 0x52f   :  { %v1094_v61 = vpop.permute.xlu1 %1093 }
 0x530   :  { %1856 = vmatpush3.xpose.msk.msra.mxu0 %vm248_vm2, %v1094_v61 }
 0x531   :  { %1865 = vmatprep.subr.mxu0 %v2064_v41 }
 0x533   :  { %v924_v62 = vpop.permute.xlu1 %923 }
 0x534   :  { %1858 = vmatmul.mubr.msk.f32.vlgmr.msra.gmra.mxu0 %vm248_vm2, %v924_v62 }
 0x535   :  { %1867 = vmatprep.mubr.msk.f32.mxu0 %vm2065_vm1, %v2064_v41 }
 0x539   :  { %v1930_v63 = vpop.eup %1929 }
 0x53a   :  { %v596_v0 = vmul.f32 %v1930_v63, %v1924_v46  ;;  %v1932_v1 = vpop.eup %1931 }
 0x53b   :  { %v598_v3 = vmul.f32 %v1932_v1, %v1922_v38 }
 0x53c   :  { %1833 = vmatmul.mubr.msk.f32.vlgmr.msra.gmra.mxu1 %vm248_vm2, %v596_v0 }
 0x53d   :  { %1841 = vmatpush3.msra.mxu1 %v828_v57  ;;  %1842 = vmatprep.mubr.msk.f32.mxu1 %vm2065_vm1, %v2064_v41 }
 0x53e   :  { %1850 = vmatprep.subr.mxu1 %v2064_v41 }
 0x540   :  { %1843 = vmatmul.mubr.msk.f32.vlgmr.msra.gmra.mxu1 %vm248_vm2, %v598_v3 }
 0x541   :  { %1851 = vmatpush3.xpose.msk.msra.mxu1 %vm248_vm2, %v1018_v58  ;;  %1852 = vmatprep.mubr.msk.f32.mxu1 %vm2065_vm1, %v2064_v41 }
 0x542   :  { %1860 = vmatprep.subr.mxu1 %v2064_v41 }
 0x544   :  { %1853 = vmatmul.mubr.msk.f32.vlgmr.msra.gmra.mxu1 %vm248_vm2, %v922_v2 }
 0x545   :  { %1861 = vmatpush3.xpose.msk.msra.mxu1 %vm248_vm2, %v1170_v4  ;;  %1862 = vmatprep.mubr.msk.f32.mxu1 %vm2065_vm1, %v2064_v41 }
 0x546   :  { %1870 = vmatprep.subr.mxu1 %v2064_v41 }
 0x548   :  { %1863 = vmatmul.mubr.msk.f32.vlgmr.msra.gmra.mxu1 %vm248_vm2, %v926_v5 }
 0x549   :  { %1872 = vmatprep.mubr.msk.f32.mxu1 %vm2065_vm1, %v2064_v41 }
 0x57f   :  { %v2258_v6 = vpop.f32.mrf.mxu0 }
 0x581   :  { %v1829_v7 = vpop.f32.mrf.mxu0 }
 0x5d7   :  { %v2260_v8 = vpop.f32.mrf.mxu0 }
 0x5d9   :  { %v1839_v9 = vpop.f32.mrf.mxu0 }
 0x5db   :  { %v1013_v10 = vpop.f32.mrf.mxu0 }
 0x5dc   :  { %v1245_v11 = vmul.f32 0.35355338, %v1013_v10 }
 0x5dd   :  { %v1849_v12 = vpop.f32.mrf.mxu0 }
 0x5de   :  { %v1249_v14 = vsel %vm248_vm2, %v1245_v11, -inf }
 0x5df   :  { %1250 = vmax.xlane.f32.xlu1 %v1249_v14 }
 0x5f0   :  { %935 = vrot.lane.b32.xlu1 %v224_v15, %s2067_s9 }
 0x5f4   :  { %939 = vrot.lane.b32.xlu1 %v224_v15, %s2069_s11  ;;  %v1165_v16 = vpop.f32.mrf.mxu0 }
 0x5f5   :  { %v1247_v27 = vmul.f32 0.35355338, %v1165_v16  ;;  %v1615_v16 = vld [vmem:[#allocation7 + $0x18] sm:$0xff] }
 0x5f6   :  { %v1859_v17 = vpop.f32.mrf.mxu0 }
 0x5f7   :  { %v1255_v13 = vsel %vm248_vm2, %v1247_v27, -inf  ;;  %v1614_v17 = vld [vmem:[#allocation7 + $0x10] sm:$0xff] }
 0x5fc   :  { %v747_v18 = vpop.f32.mrf.mxu1 }
 0x5fe   :  { %v1834_v20 = vpop.f32.mrf.mxu1 }
 0x5ff   :  { %v1613_v20 = vld [vmem:[#allocation7 + $0x8] sm:$0xff] }
 0x600   :  { %v899_v22 = vpop.f32.mrf.mxu1 }
 0x602   :  { %v1844_v23 = vpop.f32.mrf.mxu1 }
 0x604   :  { %v1089_v24 = vpop.f32.mrf.mxu1 }
 0x605   :  { %v1246_v25 = vmul.f32 0.35355338, %v1089_v24 }
 0x606   :  { %v1854_v26 = vpop.f32.mrf.mxu1 }
 0x607   :  { %v1252_v28 = vsel %vm248_vm2, %v1246_v25, -inf }
 0x608   :  { %1253 = vmax.xlane.f32.xlu0 %v1252_v28  ;;  %v1241_v29 = vpop.f32.mrf.mxu1 }
 0x609   :  { %v1248_v42 = vmul.f32 0.35355338, %v1241_v29 }
 0x60a   :  { %v1864_v30 = vpop.f32.mrf.mxu1 }
 0x60b   :  { %v1258_v31 = vsel %vm248_vm2, %v1248_v42, -inf }
 0x60c   :  { %1256 = vmax.xlane.f32.xlu0 %v1255_v13 }
 0x610   :  { %1259 = vmax.xlane.f32.xlu0 %v1258_v31 }
 0x626   :  { %937 = vrot.lane.b32.xlu0 %v224_v15, %s2068_s10 }
 0x668   :  { %v1251_v32 = vpop.xlane.xlu1 %1250 }
 0x669   :  { %v1261_v33 = vsub.f32 %v1245_v11, %v1251_v32 }
 0x66b   :  { %v1265_v34 = vmul.f32 1.442695, %v1261_v33  ;;  %v1618_v33 = vsub.s32 5, %v2124_v19 }
 0x66c   :  { %v936_v37 = vpop.permute.xlu1 %935 }
 0x66d   :  { %1933 = vpow2.f32 %v1265_v34  ;;  %v1619_v34 = vrot.slane %v2127_v21, %v1618_v33 }
 0x670   :  { %v940_v56 = vpop.permute.xlu1 %939 }
 0x67a   :  { %v1934_v35 = vpop.eup %1933 }
 0x67b   :  { %v1273_v36 = vsel %vm248_vm2, %v1934_v35, 0.0 }
 0x67c   :  { %1274 = vadd.xlane.f32.xlu1 %v1273_v36 }
 0x68d   :  { %1369 = vrot.lane.b32.xlu1 %v936_v37, %s2070_s12 }
 0x691   :  { %v1254_v38 = vpop.xlane.xlu0 %1253 }
 0x692   :  { %v1262_v39 = vsub.f32 %v1246_v25, %v1254_v38 }
 0x694   :  { %v1267_v40 = vmul.f32 1.442695, %v1262_v39 }
 0x695   :  { %v1257_v43 = vpop.xlane.xlu0 %1256 }
 0x696   :  { %1935 = vpow2.f32 %v1267_v40  ;;  %v1263_v44 = vsub.f32 %v1247_v27, %v1257_v43 }
 0x698   :  { %v1269_v45 = vmul.f32 1.442695, %v1263_v44 }
 0x699   :  { %v1260_v46 = vpop.xlane.xlu0 %1259 }
 0x69a   :  { %1937 = vpow2.f32 %v1269_v45  ;;  %v1264_v52 = vsub.f32 %v1248_v42, %v1260_v46 }
 0x69c   :  { %v1271_v53 = vmul.f32 1.442695, %v1264_v52 }
 0x69d   :  { %v938_v48 = vpop.permute.xlu0 %937 }
 0x69e   :  { %1445 = vrot.lane.b32.xlu1 %v938_v48, %s2070_s12  ;;  %1939 = vpow2.f32 %v1271_v53 }
 0x6a3   :  { %v1936_v49 = vpop.eup %1935 }
 0x6a4   :  { %v1276_v50 = vsel %vm248_vm2, %v1936_v49, 0.0 }
 0x6a5   :  { %1277 = vadd.xlane.f32.xlu0 %v1276_v50 }
 0x6a7   :  { %v1938_v51 = vpop.eup %1937 }
 0x6a8   :  { %v1279_v47 = vsel %vm248_vm2, %v1938_v51, 0.0 }
 0x6a9   :  { %1280 = vadd.xlane.f32.xlu0 %v1279_v47 }
 0x6ab   :  { %v1940_v54 = vpop.eup %1939 }
 0x6ac   :  { %v1282_v55 = vsel %vm248_vm2, %v1940_v54, 0.0 }
 0x6bf   :  { %1293 = vrot.lane.b32.xlu0 %v224_v15, %s2070_s12 }
 0x6c2   :  { %1283 = vadd.xlane.f32.xlu1 %v1282_v55 }
 0x6c3   :  { %904 = vrot.lane.b32.xlu0 %v747_v18, %s2060_s21 }
 0x6d3   :  { %1521 = vrot.lane.b32.xlu1 %v940_v56, %s2070_s12 }
 0x6d7   :  { %908 = vrot.lane.b32.xlu1 %v2260_v8, %s2071_s13 }
 0x6db   :  { %912 = vrot.lane.b32.xlu1 %v899_v22, %s2072_s14 }
 0x705   :  { %v1275_v57 = vpop.xlane.xlu1 %1274 }
 0x706   :  { %1941 = vrcp.f32 %v1275_v57 }
 0x709   :  { %v1370_v58 = vpop.permute.xlu1 %1369 }
 0x70a   :  { %1871 = vmatpush3.msra.mxu1 %v1370_v58 }
 0x70b   :  { %1880 = vmatprep.subr.mxu1 %v2064_v41 }
 0x710   :  { %v1446_v0 = vpop.permute.xlu1 %1445 }
 0x713   :  { %v1942_v61 = vpop.eup %1941 }
 0x714   :  { %v1289_v63 = vmul.f32 %v1942_v61, %v1934_v35 }
 0x72e   :  { %v1278_v59 = vpop.xlane.xlu0 %1277 }
 0x72f   :  { %1943 = vrcp.f32 %v1278_v59 }
 0x732   :  { %v1281_v60 = vpop.xlane.xlu0 %1280 }
 0x733   :  { %1945 = vrcp.f32 %v1281_v60 }
 0x736   :  { %v1294_v62 = vpop.permute.xlu0 %1293 }
 0x737   :  { %1866 = vmatpush3.msra.mxu0 %v1294_v62 }
 0x738   :  { %1868 = vmatmul.mubr.msk.f32.vlgmr.msra.gmra.mxu0 %vm248_vm2, %v1289_v63  ;;  %1875 = vmatprep.subr.mxu0 %v2064_v41 }
 0x739   :  { %1876 = vmatpush3.msra.mxu0 %v1446_v0  ;;  %1877 = vmatprep.mubr.msk.f32.mxu0 %vm2065_vm1, %v2064_v41 }
 0x73a   :  { %v905_v8 = vpop.permute.xlu0 %904  ;;  %1885 = vmatprep.subr.mxu0 %v1615_v16 }
 0x73b   :  { %v915_v10 = vsel %vm248_vm2, %v2258_v6, %v905_v8  ;;  %v1612_v6 = vld [vmem:[#allocation7] sm:$0xff] }
 0x73c   :  { %v1944_v1 = vpop.eup %1943 }
 0x73d   :  { %v1290_v2 = vmul.f32 %v1944_v1, %v1936_v49 }
 0x73f   :  { %1873 = vmatmul.mubr.msk.f32.vlgmr.msra.gmra.mxu1 %vm248_vm2, %v1290_v2 }
 0x740   :  { %v1946_v3 = vpop.eup %1945  ;;  %1882 = vmatprep.mubr.msk.f32.mxu1 %vm2065_vm1, %v2064_v41 }
 0x741   :  { %v1291_v4 = vmul.f32 %v1946_v3, %v1938_v51 }
 0x743   :  { %1878 = vmatmul.mubr.msk.f32.vlgmr.msra.gmra.mxu0 %vm248_vm2, %v1291_v4 }
 0x744   :  { %1886 = vmatpush3.msra.mxu0 %v1615_v16 }
 0x745   :  { %1887 = vmatprep.subr.mxu0 %v1614_v17 }
 0x746   :  { %1888 = vmatpush3.msra.mxu0 %v1614_v17 }
 0x747   :  { %1889 = vmatprep.subr.mxu0 %v1613_v20 }
 0x748   :  { %1890 = vmatpush3.msra.mxu0 %v1613_v20 }
 0x749   :  { %1891 = vmatprep.subr.mxu0 %v1612_v6 }
 0x74a   :  { %1892 = vmatpush3.msra.mxu0 %v1612_v6 }
 0x74b   :  { %v1284_v5 = vpop.xlane.xlu1 %1283 }
 0x74c   :  { %1947 = vrcp.f32 %v1284_v5 }
 0x74f   :  { %v1522_v7 = vpop.permute.xlu1 %1521 }
 0x750   :  { %1881 = vmatpush3.msra.mxu1 %v1522_v7 }
 0x753   :  { %v909_v9 = vpop.permute.xlu1 %908 }
 0x754   :  { %v917_v11 = vsel %vm916_vm3, %v915_v10, %v909_v9 }
 0x757   :  { %v913_v12 = vpop.permute.xlu1 %912 }
 0x758   :  { %v919_v14 = vsel %vm918_vm4, %v917_v11, %v913_v12 }
 0x759   :  { %v1948_v41 = vpop.eup %1947  ;;  %1893 = vmatprep.mubr.msk.f32.mxu0 %vm74_vm0, %v919_v14 }
 0x75a   :  { %v1292_v15 = vmul.f32 %v1948_v41, %v1940_v54 }
 0x75c   :  { %1883 = vmatmul.mubr.msk.f32.vlgmr.msra.gmra.mxu1 %vm248_vm2, %v1292_v15 }
 0x7f8   :  { %v1365_v18 = vpop.f32.mrf.mxu0 }
 0x7fa   :  { %v1869_v22 = vpop.f32.mrf.mxu0 }
 0x7ff   :  { %v1441_v23 = vpop.f32.mrf.mxu1 }
 0x800   :  { %1598 = vrot.lane.b32.xlu0 %v1441_v23, %s2060_s21 }
 0x801   :  { %v1874_v24 = vpop.f32.mrf.mxu1 }
 0x803   :  { %v1517_v25 = vpop.f32.mrf.mxu0 }
 0x804   :  { %1602 = vrot.lane.b32.xlu0 %v1517_v25, %s2071_s13 }
 0x805   :  { %v1879_v26 = vpop.f32.mrf.mxu0 }
 0x81c   :  { %v1593_v27 = vpop.f32.mrf.mxu1 }
 0x81d   :  { %1606 = vrot.lane.b32.xlu1 %v1593_v27, %s2072_s14 }
 0x81e   :  { %v1884_v28 = vpop.f32.mrf.mxu1 }
 0x872   :  { %v1599_v29 = vpop.permute.xlu0 %1598 }
 0x873   :  { %v1609_v42 = vsel %vm248_vm2, %v1365_v18, %v1599_v29 }
 0x876   :  { %v1603_v30 = vpop.permute.xlu0 %1602 }
 0x877   :  { %v1610_v13 = vsel %vm916_vm3, %v1609_v42, %v1603_v30 }
 0x88f   :  { %v1607_v31 = vpop.permute.xlu1 %1606 }
 0x890   :  { %v1611_v32 = vsel %vm918_vm4, %v1610_v13, %v1607_v31 }
 0x891   :  { %1894 = vmatmul.mubr.msk.f32.vlgmr.msra.gmra.mxu0 %vm74_vm0, %v1611_v32 }
 0x951   :  { %v1895_v35 = vpop.f32.mrf.mxu0 }
 0x952   :  { %v1698_v36 = vadd.f32 %v1895_v35, %v1619_v34 }
 0x953   :  { %v1692_v37 = vpop.f32.mrf.mxu0 }
 0x954   :  { %1702 = vst.msk [vmem:[#allocation10 + $0x8] sm:$0xff] %vm74_vm0, %v1698_v36  ;;  %v1693_v38 = vadd.f32 %v1692_v37, %v1619_v34 }
 0x956   :  { %1701 = vst.msk [vmem:[#allocation10] sm:$0xff] %vm74_vm0, %v1693_v38 }
 0x957   :  { %2040 = shalt.err (!%p2037_p10)
}
 0x958   :  { %1714 = dma.vmem_to_hbm [thread:$0]  %s1709_s16, 256, %s2319_s4, [#allocation4], %s2059_s20, %s2059_s20, %s2060_s21  }
 0x959   :  { %2055 = dma.done.wait [#allocation4], 256  }
 0x95a   :  { %2056 = vsyncadd [#allocation4], 4294967040 }
 0x95b   :  { %1718 = vsyncpa [#allocation3], 1 }
 0x95c   :  { %1719 = vsyncpa [#allocation6], 1 }
 0x95d   :  { %1720 = vsyncpa [#allocation9], 1 }
 0x95e   :  { %1721 = vsyncpa [#allocation4], 1 }

</bundles_post_ra>
